<compile_context>
chip_gen: v7x
topology: tpu7x:2x2x1
jax: 0.10.0
libtpu: 0.0.40
codegen_flags: <defaults>
</compile_context>

<pallas_src>
import math
import functools

import jax
import jax.numpy as jnp
from jax.experimental import pallas as pl
from jax.experimental.pallas import tpu as pltpu


_INV_SQRT2 = 1.0 / math.sqrt(2.0)


def _erf_f32(x):
    """Exact-GELU-grade erf from guaranteed-lowerable primitives.

    Abramowitz & Stegun 7.1.26, |error| <= 1.5e-7 (f32-level accuracy).
    # TODO(synk): switch to jax.lax.erf if/when Mosaic exposes a native erf lowering.
    """
    a1 = 0.254829592
    a2 = -0.284496736
    a3 = 1.421413741
    a4 = -1.453152027
    a5 = 1.061405429
    p = 0.3275911
    ax = jnp.abs(x)
    t = 1.0 / (1.0 + p * ax)
    poly = ((((a5 * t + a4) * t + a3) * t + a2) * t + a1) * t
    y = 1.0 - poly * jnp.exp(-ax * ax)
    return jnp.where(x < 0.0, -y, y)


def _ernie_intermediate_kernel(x_ref, w_ref, b_ref, o_ref):
    # x_ref: (tm, K), w_ref: (K, tn), b_ref: (1, tn) f32, o_ref: (tm, tn).
    # Single MXU matmul over the full K, f32 accumulation, then bias + exact
    # GELU epilogue in f32, written directly to the output block.
    acc = jnp.dot(x_ref[...], w_ref[...], preferred_element_type=jnp.float32)
    y = acc + b_ref[...]
    g = 0.5 * y * (1.0 + _erf_f32(y * _INV_SQRT2))
    o_ref[...] = g.astype(o_ref.dtype)


@functools.partial(jax.jit, static_argnames=("tm", "tn", "compute_dtype"))
def ernie_intermediate(hidden_states, weight, bias, *, tm=512, tn=1024,
                       compute_dtype=None):
    """hidden_states: (B, S, H); weight: (H, I); bias: (I,). Returns (B, S, I)."""
    B, S, H = hidden_states.shape
    Hw, I = weight.shape
    assert Hw == H, "weight first dim must equal hidden size"
    M = B * S
    out_dtype = hidden_states.dtype

    x2d = hidden_states.reshape(M, H)
    w2d = weight
    b2d = bias.reshape(1, I).astype(jnp.float32)

    # Optional bf16 MXU feed (f32 accumulation stays inside the kernel).
    if compute_dtype is not None:
        cd = jnp.dtype(compute_dtype)
        if x2d.dtype != cd:
            x2d = x2d.astype(cd)
        if w2d.dtype != cd:
            w2d = w2d.astype(cd)

    # ---- Tile selection (no padding: full-K blocks, cdiv grids). ----
    tm_cap = max(8, (int(tm) // 8) * 8)        # sublane multiple of 8
    tn_cap = max(128, (int(tn) // 128) * 128)  # lane multiple of 128
    tm_ = M if M <= tm_cap else tm_cap
    tn_ = I if I <= tn_cap else tn_cap
    grid_m = pl.cdiv(M, tm_)
    grid_n = pl.cdiv(I, tn_)

    # Small-M case: split the N axis so both TensorCores get work.
    if grid_m == 1 and grid_n == 1 and I >= 512 and I % 256 == 0:
        tn_ = I // 2
        grid_n = 2

    # ---- VMEM budget: double-buffered blocks + headroom, >=32 MiB, <=64 MiB. ----
    xb = tm_ * H * jnp.dtype(x2d.dtype).itemsize
    wb = H * tn_ * jnp.dtype(w2d.dtype).itemsize
    bb = tn_ * 4
    ob = tm_ * tn_ * jnp.dtype(out_dtype).itemsize
    working_set = xb + wb + bb + ob
    vmem_limit = int(min(64 * 1024 * 1024,
                         max(32 * 1024 * 1024, 2 * working_set + (4 << 20))))

    out = pl.pallas_call(
        _ernie_intermediate_kernel,
        out_shape=jax.ShapeDtypeStruct((M, I), out_dtype),
        grid_spec=pltpu.PrefetchScalarGridSpec(
            num_scalar_prefetch=0,
            grid=(grid_m, grid_n),
            in_specs=[
                pl.BlockSpec((tm_, H), lambda i, j: (i, 0)),   # X: resident across j
                pl.BlockSpec((H, tn_), lambda i, j: (0, j)),   # W tile
                pl.BlockSpec((1, tn_), lambda i, j: (0, j)),   # bias tile (f32)
            ],
            out_specs=pl.BlockSpec((tm_, tn_), lambda i, j: (i, j)),
        ),
        compiler_params=pltpu.CompilerParams(
            dimension_semantics=("parallel", "parallel"),
            vmem_limit_bytes=vmem_limit,
        ),
    )(x2d, w2d, b2d)

    return out.reshape(B, S, I)


if __name__ == "__main__":
    # Small config: batch=2, seq=8, hidden_size=32, intermediate_size=128.
    batch, seq, hidden, intermediate = 2, 8, 32, 128

    key = jax.random.PRNGKey(0)
    kx, kw, kb = jax.random.split(key, 3)

    hidden_states = jax.random.normal(kx, (batch, seq, hidden), dtype=jnp.float32)
    # Deterministic "Linear" parameters (shapes from nn.Linear(hidden, intermediate)).
    weight = (jax.random.normal(kw, (hidden, intermediate), dtype=jnp.float32)
              * (1.0 / math.sqrt(hidden)))
    bias = jax.random.normal(kb, (intermediate,), dtype=jnp.float32) * 0.02

    out = ernie_intermediate(hidden_states, weight, bias)
    out = jax.block_until_ready(out)

    # Reference: high-precision matmul + exact (erf) GELU in plain JAX.
    ref_lin = jnp.dot(hidden_states.reshape(-1, hidden), weight,
                      precision=jax.lax.Precision.HIGHEST) + bias
    ref = 0.5 * ref_lin * (1.0 + jax.lax.erf(ref_lin * _INV_SQRT2))
    ref = ref.reshape(batch, seq, intermediate)

    assert out.shape == (batch, seq, intermediate)
    # Tolerance covers possible bf16-pass f32 matmul on either side at K=32.
    assert jnp.allclose(out, ref, atol=1e-2, rtol=1e-2), \
        float(jnp.max(jnp.abs(out - ref)))

    # bf16 MXU-feed path (f32 accumulation) — looser tolerance.
    out_bf16 = ernie_intermediate(hidden_states, weight, bias,
                                  compute_dtype=jnp.bfloat16)
    out_bf16 = jax.block_until_ready(out_bf16)
    assert out_bf16.shape == (batch, seq, intermediate)
    assert jnp.allclose(out_bf16, ref, atol=1e-1, rtol=1e-1), \
        float(jnp.max(jnp.abs(out_bf16 - ref)))

    print("KERNEL_OK")
</pallas_src>

<mosaic_0001>
module attributes {stable_mosaic.version = 11 : i64} {
  func.func @_ernie_intermediate_kernel(%arg0: i32, %arg1: i32, %arg2: memref<16x32xf32, #tpu.memory_space<vmem>>, %arg3: memref<32x128xf32, #tpu.memory_space<vmem>>, %arg4: memref<1x128xf32, #tpu.memory_space<vmem>>, %arg5: memref<16x128xf32, #tpu.memory_space<vmem>>) attributes {dimension_semantics = [#tpu.dimension_semantics<parallel>, #tpu.dimension_semantics<parallel>], iteration_bounds = array<i64: 1, 1>, scalar_prefetch = 0 : i64, scratch_operands = 0 : i64, tpu.core_type = #tpu.core_type<tc>, window_params = [{transform_indices = @transform_0, window_bounds = array<i64: 16, 32>}, {transform_indices = @transform_1, window_bounds = array<i64: 32, 128>}, {transform_indices = @transform_2, window_bounds = array<i64: 1, 128>}, {transform_indices = @transform_3, window_bounds = array<i64: 16, 128>}]} {
    %c0 = arith.constant 0 : index
    %c0_0 = arith.constant 0 : index
    %0 = vector.load %arg2[%c0, %c0_0] : memref<16x32xf32, #tpu.memory_space<vmem>>, vector<16x32xf32>
    %c0_1 = arith.constant 0 : index
    %c0_2 = arith.constant 0 : index
    %1 = vector.load %arg3[%c0_1, %c0_2] : memref<32x128xf32, #tpu.memory_space<vmem>>, vector<32x128xf32>
    %cst = arith.constant dense<0.000000e+00> : vector<16x128xf32>
    %2 = tpu.matmul %0, %1, %cst {dimension_numbers = #tpu.dot_dimension_numbers<[1], [0], [0], [1], [0, 0, 1, 1], [], []>} : vector<16x32xf32>, vector<32x128xf32>, vector<16x128xf32> -> vector<16x128xf32>
    %c0_3 = arith.constant 0 : index
    %c0_4 = arith.constant 0 : index
    %3 = vector.load %arg4[%c0_3, %c0_4] : memref<1x128xf32, #tpu.memory_space<vmem>>, vector<1x128xf32>
    %4 = vector.broadcast %3 : vector<1x128xf32> to vector<16x128xf32>
    %5 = arith.addf %2, %4 : vector<16x128xf32>
    %cst_5 = arith.constant 5.000000e-01 : f32
    %6 = vector.broadcast %cst_5 : f32 to vector<16x128xf32>
    %7 = arith.mulf %6, %5 : vector<16x128xf32>
    %cst_6 = arith.constant 0.707106769 : f32
    %8 = vector.broadcast %cst_6 : f32 to vector<16x128xf32>
    %9 = arith.mulf %5, %8 : vector<16x128xf32>
    %10 = math.absf %9 : vector<16x128xf32>
    %cst_7 = arith.constant 0.327591091 : f32
    %11 = vector.broadcast %cst_7 : f32 to vector<16x128xf32>
    %12 = arith.mulf %11, %10 : vector<16x128xf32>
    %cst_8 = arith.constant 1.000000e+00 : f32
    %13 = vector.broadcast %cst_8 : f32 to vector<16x128xf32>
    %14 = arith.addf %13, %12 : vector<16x128xf32>
    %cst_9 = arith.constant 1.000000e+00 : f32
    %15 = vector.broadcast %cst_9 : f32 to vector<16x128xf32>
    %16 = arith.divf %15, %14 : vector<16x128xf32>
    %cst_10 = arith.constant 1.06140542 : f32
    %17 = vector.broadcast %cst_10 : f32 to vector<16x128xf32>
    %18 = arith.mulf %17, %16 : vector<16x128xf32>
    %cst_11 = arith.constant -1.45315206 : f32
    %19 = vector.broadcast %cst_11 : f32 to vector<16x128xf32>
    %20 = arith.addf %18, %19 : vector<16x128xf32>
    %21 = arith.mulf %20, %16 : vector<16x128xf32>
    %cst_12 = arith.constant 1.42141378 : f32
    %22 = vector.broadcast %cst_12 : f32 to vector<16x128xf32>
    %23 = arith.addf %21, %22 : vector<16x128xf32>
    %24 = arith.mulf %23, %16 : vector<16x128xf32>
    %cst_13 = arith.constant -0.284496725 : f32
    %25 = vector.broadcast %cst_13 : f32 to vector<16x128xf32>
    %26 = arith.addf %24, %25 : vector<16x128xf32>
    %27 = arith.mulf %26, %16 : vector<16x128xf32>
    %cst_14 = arith.constant 0.254829586 : f32
    %28 = vector.broadcast %cst_14 : f32 to vector<16x128xf32>
    %29 = arith.addf %27, %28 : vector<16x128xf32>
    %30 = arith.mulf %29, %16 : vector<16x128xf32>
    %cst_15 = arith.constant 0.000000e+00 : f32
    %31 = vector.broadcast %cst_15 : f32 to vector<16x128xf32>
    %32 = arith.subf %31, %10 : vector<16x128xf32>
    %33 = arith.mulf %32, %10 : vector<16x128xf32>
    %34 = math.exp %33 : vector<16x128xf32>
    %35 = arith.mulf %30, %34 : vector<16x128xf32>
    %cst_16 = arith.constant 1.000000e+00 : f32
    %36 = vector.broadcast %cst_16 : f32 to vector<16x128xf32>
    %37 = arith.subf %36, %35 : vector<16x128xf32>
    %cst_17 = arith.constant 0.000000e+00 : f32
    %38 = vector.broadcast %cst_17 : f32 to vector<16x128xf32>
    %39 = arith.cmpf olt, %9, %38 : vector<16x128xf32>
    %cst_18 = arith.constant 0.000000e+00 : f32
    %40 = vector.broadcast %cst_18 : f32 to vector<16x128xf32>
    %41 = arith.subf %40, %37 : vector<16x128xf32>
    %42 = arith.select %39, %41, %37 : vector<16x128xi1>, vector<16x128xf32>
    %cst_19 = arith.constant 1.000000e+00 : f32
    %43 = vector.broadcast %cst_19 : f32 to vector<16x128xf32>
    %44 = arith.addf %43, %42 : vector<16x128xf32>
    %45 = arith.mulf %7, %44 : vector<16x128xf32>
    %c0_20 = arith.constant 0 : index
    %c0_21 = arith.constant 0 : index
    %46 = vector.load %arg5[%c0_20, %c0_21] : memref<16x128xf32, #tpu.memory_space<vmem>>, vector<16x128xf32>
    tpu.vector_store %arg5[%c0_20, %c0_21], %45 {strides = array<i32>} : memref<16x128xf32, #tpu.memory_space<vmem>>, vector<16x128xf32>,
    return
  }
  func.func @transform_0(%arg0: i32, %arg1: i32) -> (i32, i32) {
    %c0_i32 = arith.constant 0 : i32
    %c0_i32_0 = arith.constant 0 : i32
    return %arg0, %c0_i32 : i32, i32
  }
  func.func @transform_1(%arg0: i32, %arg1: i32) -> (i32, i32) {
    %c0_i32 = arith.constant 0 : i32
    %c0_i32_0 = arith.constant 0 : i32
    return %c0_i32, %arg1 : i32, i32
  }
  func.func @transform_2(%arg0: i32, %arg1: i32) -> (i32, i32) {
    %c0_i32 = arith.constant 0 : i32
    %c0_i32_0 = arith.constant 0 : i32
    return %c0_i32, %arg1 : i32, i32
  }
  func.func @transform_3(%arg0: i32, %arg1: i32) -> (i32, i32) {
    %c0_i32 = arith.constant 0 : i32
    return %arg0, %arg1 : i32, i32
  }
}

</mosaic_0001>

<bundles_post_ra>
// kernel: ernie_intermediate.1
= control target key start
LH: loop header
LB: loop body
LE: loop exit
PB: predicated region body
PF: predicated region fallthrough
CT: control target
= control target key end

     0   :  { %8 = vsyncpa [#allocation3], 0  ;;  %s398_s0 = inlined_call_operand.hbm [shape: f32[16,32], index: 0, kind: input, shape index: {}]   ;;  %s399_s1 = inlined_call_operand.hbm [shape: f32[32,128], index: 1, kind: input, shape index: {}]   ;;  %s400_s2 = inlined_call_operand.vmem [shape: f32[1,128], index: 2, kind: input, shape index: {}]   ;;  %s401_s3 = inlined_call_operand.hbm [shape: f32[16,128], index: 3, kind: output, shape index: {}]  }
   0x1   :  { %9 = vsyncpa [#allocation6], 0 }
   0x2   :  { %10 = vsyncpa [#allocation4], 0  ;;  %s325_s12 = smov [#allocation2]   ;;  %s253_s16 = scalar_lea.hbm %s398_s0, 256 }
   0x3   :  { %s16_s13 = sshll.u32 %s325_s12, 4  ;;  %p254_p0 = scmp.ne.s32.totalorder %s398_s0, %s253_s16  ;;  %s17_s13 = int_to_ptr.vmem [resolvable:$true] %s16_s13 }
   0x4   :  { %p257_p1 = scmp.lt.u32.totalorder %s253_s16, %s398_s0 }
   0x6   :  { %p259_p2 = pnand %p257_p1, %p254_p0 }
   0x8   :  { %262 = shalt.err (!%p259_p2)
}
   0x9   :  { %s263_s21 = scalar_lea.vmem %s17_s13, 256  ;;  %p268_p4 = scmp.lt.s32.totalorder %s17_s13, %s17_s13 }
   0xa   :  { %p264_p3 = scmp.ne.s32.totalorder %s17_s13, %s263_s21  ;;  %p269_p5 = scmp.lt.s32.totalorder %s263_s21, %s263_s21 }
   0xc   :  { %p270_p6 = por %p269_p5, %p268_p4 }
   0xe   :  { %p271_p7 = pnand %p270_p6, %p264_p3 }
  0x10   :  { %274 = shalt.err (!%p271_p7)
}
  0x11   :  { %s326_s22 = smov 128   ;;  %s327_s23 = smov 8  }
  0x12   :  { %22 = dma.hbm_to_vmem [thread:$0]  %s398_s0, 256, %s17_s13, [#allocation3], %s326_s22, %s326_s22, %s327_s23  }
  0x13   :  { %s328_s26 = smov [#allocation5]   ;;  %s275_s30 = scalar_lea.hbm %s399_s1, 512 }
  0x14   :  { %s28_s27 = sshll.u32 %s328_s26, 4  ;;  %p276_p8 = scmp.ne.s32.totalorder %s399_s1, %s275_s30  ;;  %s29_s27 = int_to_ptr.vmem [resolvable:$true] %s28_s27 }
  0x15   :  { %p279_p9 = scmp.lt.u32.totalorder %s275_s30, %s399_s1 }
  0x17   :  { %p281_p10 = pnand %p279_p9, %p276_p8 }
  0x19   :  { %284 = shalt.err (!%p281_p10)
}
  0x1a   :  { %s285_s8 = scalar_lea.vmem %s29_s27, 512  ;;  %p290_p12 = scmp.lt.s32.totalorder %s29_s27, %s29_s27 }
  0x1b   :  { %p286_p11 = scmp.ne.s32.totalorder %s29_s27, %s285_s8  ;;  %p291_p13 = scmp.lt.s32.totalorder %s285_s8, %s285_s8 }
  0x1d   :  { %p292_p0 = por %p291_p13, %p290_p12 }
  0x1f   :  { %p293_p1 = pnand %p292_p0, %p286_p11 }
  0x21   :  { %296 = shalt.err (!%p293_p1)
}
  0x22   :  { %34 = dma.hbm_to_vmem [thread:$0]  %s399_s1, 512, %s29_s27, [#allocation6], %s326_s22, %s326_s22, %s327_s23  }
  0x23   :  { %319 = dma.done.wait [#allocation3], 256  }
  0x24   :  { %320 = vsyncadd [#allocation3], 4294967040 }
  0x25   :  { %321 = dma.done.wait [#allocation6], 512  }
  0x26   :  { %322 = vsyncadd [#allocation6], 4294966784  ;;  %vm56_vm0 = vcmask 261120   ;;  %v45_v0 = vld [vmem:[#allocation5] sm:$0xff]  ;;  %v46_v1 = vld [vmem:[#allocation5 + $0x8] sm:$0xff] }
  0x27   :  { %v47_v2 = vld [vmem:[#allocation5 + $0x10] sm:$0xff]  ;;  %v232_v3 = vpack.c.bf16 %v46_v1, %v45_v0  ;;  %v48_v4 = vld [vmem:[#allocation5 + $0x18] sm:$0xff] }
  0x28   :  { %v43_v5 = vld [vmem:[#allocation2] sm:$0xff]  ;;  %v236_v6 = vpack.c.bf16 %v48_v4, %v47_v2  ;;  %v44_v7 = vld [vmem:[#allocation2 + $0x8] sm:$0xff] }
  0x29   :  { %229 = vmatprep.mubr.msk.f32.mxu0 %vm56_vm0, %v43_v5  ;;  %233 = vmatprep.subr.bf16.mxu0 %v232_v3  ;;  %v212_v8 = vld [vmem:[%s400_s2] ss:$0 sm:$0xff]  ;;  %s329_s2 = smov [#allocation7]  }
  0x2a   :  { %235 = vmatpush3.bf16.msra.mxu0 %v232_v3  ;;  %s199_s11 = sshll.u32 %s329_s2, 4  ;;  %s200_s11 = int_to_ptr.vmem [resolvable:$true] %s199_s11 }
  0x2b   :  { %237 = vmatprep.subr.bf16.mxu0 %v236_v6  ;;  %s297_s12 = scalar_lea.vmem %s200_s11, 256  ;;  %p302_p3 = scmp.lt.s32.totalorder %s200_s11, %s200_s11 }
  0x2c   :  { %p298_p2 = scmp.ne.s32.totalorder %s200_s11, %s297_s12  ;;  %p303_p4 = scmp.lt.s32.totalorder %s297_s12, %s297_s12 }
  0x2e   :  { %239 = vmatpush3.bf16.msra.mxu0 %v236_v6  ;;  %p304_p5 = por %p303_p4, %p302_p3 }
  0x30   :  { %p305_p6 = pnand %p304_p5, %p298_p2 }
  0x31   :  { %230 = vmatmul.mubr.msk.f32.vlgmr.msra.gmra.mrb[0].mxu0 %vm56_vm0, %v44_v7 }
 0x104   :  { %v231_v9 = vpop.f32.mrb[0].mxu0 }
 0x105   :  { %v135_v10 = vadd.f32 %v231_v9, %v212_v8  ;;  %v129_v11 = vpop.f32.mrb[1].mxu0 }
 0x106   :  { %v130_v12 = vadd.f32 %v212_v8, %v129_v11 }
 0x107   :  { %v141_v13 = vmul.f32 0.70710677, %v135_v10  ;;  %v139_v56 = vmul.f32 0.5, %v135_v10 }
 0x108   :  { %v140_v14 = vmul.f32 0.70710677, %v130_v12  ;;  %v138_v59 = vmul.f32 0.5, %v130_v12 }
 0x109   :  { %v143_v15 = vand.u32 2147483647, %v141_v13  ;;  %vm183_vm1 = vcmp.lt.f32.partialorder %v141_v13, 0.0 }
 0x10a   :  { %v142_v16 = vand.u32 2147483647, %v140_v14  ;;  %vm182_vm2 = vcmp.lt.f32.partialorder %v140_v14, 0.0 }
 0x10b   :  { %v145_v17 = vmul.f32 0.3275911, %v143_v15  ;;  %v171_v21 = vsub.f32 0.0, %v143_v15 }
 0x10c   :  { %v144_v18 = vmul.f32 0.3275911, %v142_v16  ;;  %v170_v22 = vsub.f32 0.0, %v142_v16 }
 0x10d   :  { %v147_v19 = vadd.f32 1.0, %v145_v17  ;;  %v173_v24 = vmul.f32 %v171_v21, %v143_v15 }
 0x10e   :  { %v146_v20 = vadd.f32 1.0, %v144_v18  ;;  %v172_v27 = vmul.f32 %v170_v22, %v142_v16 }
 0x10f   :  { %245 = vrcp.f32 %v147_v19  ;;  %v176_v30 = vmul.f32 1.442695, %v173_v24 }
 0x110   :  { %247 = vrcp.f32 %v146_v20  ;;  %v174_v33 = vmul.f32 1.442695, %v172_v27 }
 0x111   :  { %249 = vpow2.f32 %v176_v30 }
 0x112   :  { %251 = vpow2.f32 %v174_v33 }
 0x119   :  { %v246_v23 = vpop.eup %245 }
 0x11a   :  { %v248_v25 = vpop.eup %247  ;;  %v153_v26 = vmul.f32 1.0614054, %v246_v23 }
 0x11b   :  { %v152_v28 = vmul.f32 1.0614054, %v248_v25  ;;  %v250_v46 = vpop.eup %249 }
 0x11c   :  { %v155_v29 = vadd.f32 -1.4531521, %v153_v26  ;;  %v252_v48 = vpop.eup %251 }
 0x11d   :  { %v154_v31 = vadd.f32 -1.4531521, %v152_v28 }
 0x11e   :  { %v157_v32 = vmul.f32 %v246_v23, %v155_v29 }
 0x11f   :  { %v156_v34 = vmul.f32 %v248_v25, %v154_v31 }
 0x120   :  { %v159_v35 = vadd.f32 1.4214138, %v157_v32 }
 0x121   :  { %v158_v36 = vadd.f32 1.4214138, %v156_v34 }
 0x122   :  { %v161_v37 = vmul.f32 %v246_v23, %v159_v35 }
 0x123   :  { %v160_v38 = vmul.f32 %v248_v25, %v158_v36 }
 0x124   :  { %v163_v39 = vadd.f32 -0.28449672, %v161_v37 }
 0x125   :  { %v162_v40 = vadd.f32 -0.28449672, %v160_v38 }
 0x126   :  { %v165_v41 = vmul.f32 %v246_v23, %v163_v39 }
 0x127   :  { %v164_v42 = vmul.f32 %v248_v25, %v162_v40 }
 0x128   :  { %v167_v43 = vadd.f32 0.2548296, %v165_v41 }
 0x129   :  { %v166_v44 = vadd.f32 0.2548296, %v164_v42 }
 0x12a   :  { %v169_v45 = vmul.f32 %v246_v23, %v167_v43 }
 0x12b   :  { %v168_v47 = vmul.f32 %v248_v25, %v166_v44 }
 0x12c   :  { %v179_v49 = vmul.f32 %v250_v46, %v169_v45 }
 0x12d   :  { %v178_v50 = vmul.f32 %v252_v48, %v168_v47 }
 0x12e   :  { %v181_v51 = vsub.f32 1.0, %v179_v49 }
 0x12f   :  { %v180_v52 = vsub.f32 1.0, %v178_v50 }
 0x130   :  { %v185_v53 = vsub.f32 0.0, %v181_v51 }
 0x131   :  { %v184_v54 = vsub.f32 0.0, %v180_v52 }
 0x132   :  { %v187_v55 = vsel %vm183_vm1, %v185_v53, %v181_v51 }
 0x133   :  { %v189_v57 = vadd.f32 1.0, %v187_v55  ;;  %v186_v58 = vsel %vm182_vm2, %v184_v54, %v180_v52 }
 0x134   :  { %v188_v60 = vadd.f32 1.0, %v186_v58 }
 0x135   :  { %v191_v61 = vmul.f32 %v189_v57, %v139_v56 }
 0x136   :  { %v190_v62 = vmul.f32 %v188_v60, %v138_v59 }
 0x137   :  { %193 = vst [vmem:[#allocation7 + $0x8] sm:$0xff] %v191_v61 }
 0x138   :  { %192 = vst [vmem:[#allocation7] sm:$0xff] %v190_v62 }
 0x139   :  { %308 = shalt.err (!%p305_p6)
}
 0x13a   :  { %s309_s15 = scalar_lea.hbm %s401_s3, 256 }
 0x13b   :  { %p310_p7 = scmp.ne.s32.totalorder %s401_s3, %s309_s15  ;;  %p313_p8 = scmp.lt.u32.totalorder %s309_s15, %s401_s3 }
 0x13d   :  { %p315_p9 = pnand %p313_p8, %p310_p7 }
 0x13f   :  { %318 = shalt.err (!%p315_p9)
}
 0x140   :  { %205 = dma.vmem_to_hbm [thread:$0]  %s200_s11, 256, %s401_s3, [#allocation4], %s326_s22, %s326_s22, %s327_s23  }
 0x141   :  { %323 = dma.done.wait [#allocation4], 256  }
 0x142   :  { %324 = vsyncadd [#allocation4], 4294967040 }
 0x143   :  { %209 = vsyncpa [#allocation3], 1 }
 0x144   :  { %210 = vsyncpa [#allocation6], 1 }
 0x145   :  { %211 = vsyncpa [#allocation4], 1 }

</bundles_post_ra>
